<compile_context>
chip_gen: v5e
topology: v5e:2x2
jax: 0.10.0
libtpu: 0.0.40
codegen_flags: <defaults>
</compile_context>

<pallas_src>
import jax
import jax.numpy as jnp
from jax.experimental import pallas as pl
from jax.experimental.pallas import tpu as pltpu


# ------------------------------- wrapper ---------------------------------
def _pack_inputs(features, a_coord, a_feat, a_comb, p):
    fin, hid = p["wg_ec"].shape
    dout = p["wf_ec"].shape[1]

    adj = jnp.stack([a_coord, a_feat, a_comb], axis=0)                  # (3, N, N)

    # encoder GCN weights, lane-concatenated
    w_enc_g = jnp.concatenate([p["wg_ec"], p["wg_ef"]], axis=1)         # (FIN, 2H)

    # encoder fc weights, block-diagonal
    w_enc_f = jnp.zeros((2 * hid, 2 * dout), jnp.float32)
    w_enc_f = (w_enc_f.at[:hid, :dout].set(p["wf_ec"])
                      .at[hid:, dout:].set(p["wf_ef"]))                 # (2H, 2D)

    # latent-side slab: [ w_omega | wf_d | wf_da ]  + u_omega as an extra row
    w_lat = jnp.zeros((dout + 1, dout + 2 * hid), jnp.float32)
    w_lat = (w_lat.at[:dout, :dout].set(p["w_omega"])
                   .at[:dout, dout:dout + hid].set(p["wf_d"])
                   .at[:dout, dout + hid:].set(p["wf_da"])
                   .at[dout, :dout].set(p["u_omega"][:, 0]))            # (D+1, D+2H)

    # decoder GCN weights, row-stacked
    w_dec_g = jnp.concatenate([p["wg_d"], p["wg_da"]], axis=0)          # (2H, FIN)

    # one bias slab (rows: enc-gcn, enc-fc, dec-fc shared, dec-fc att, dec-gcn, dec-gcn att)
    bw = max(2 * hid, 2 * dout, fin)
    bias = jnp.zeros((6, bw), jnp.float32)
    bias = (bias.at[0, :2 * hid].set(jnp.concatenate([p["bg_ec"][0], p["bg_ef"][0]]))
                .at[1, :2 * dout].set(jnp.concatenate([p["bf_ec"][0], p["bf_ef"][0]]))
                .at[2, :hid].set(p["bf_d"][0])
                .at[3, :hid].set(p["bf_da"][0])
                .at[4, :fin].set(p["bg_d"][0])
                .at[5, :fin].set(p["bg_da"][0]))

    return features, adj, w_enc_g, w_enc_f, w_lat, w_dec_g, bias


def sage_forward(features, a_coord, a_feat, a_comb, params):
    n, fin = features.shape
    hid = params["wg_ec"].shape[1]
    dout = params["wf_ec"].shape[1]

    total = 3 * fin + 3 * dout + 2
    out_w = ((total + 127) // 128) * 128          # lane-dense output width
    pad = out_w - total

    # ----------------------------- Pallas kernel -----------------------------
    def kernel(x_ref, adj_ref, weg_ref, wef_ref, wlat_ref, wdg_ref, b_ref, out_ref):
        def mm(a, b):
            return jax.lax.dot_general(
                a, b, (((1,), (0,)), ((), ())),
                preferred_element_type=jnp.float32)

        x = x_ref[...]
        a_c = adj_ref[0]
        a_f = adj_ref[1]
        a_m = adj_ref[2]

        # --- Encoders: GCNConv(Fin->H) then Linear(H->D), both views fused ---
        hpre = mm(x, weg_ref[...])                                  # (N, 2H)
        h_c = mm(a_c, hpre[:, :hid])                                # (N, H)
        h_f = mm(a_f, hpre[:, hid:])                                # (N, H)
        h_both = jnp.concatenate([h_c, h_f], axis=1) + b_ref[0:1, :2 * hid]
        lat_both = mm(h_both, wef_ref[...]) + b_ref[1:2, :2 * dout]  # (N, 2D)
        lat_c = lat_both[:, :dout]
        lat_f = lat_both[:, dout:]

        # --- Row-stacked views: attention projection + shared decoder fc1 in one matmul ---
        lat_stack = jnp.concatenate([lat_c, lat_f], axis=0)          # (2N, D)
        comb = mm(lat_stack, wlat_ref[:dout, :dout + hid])           # (2N, D+H)

        # AttentionLayer (2-way softmax)
        v = jnp.tanh(comb[:, :dout])                                 # (2N, D)
        u = wlat_ref[dout:dout + 1, :dout]                           # (1, D)
        vu = jnp.sum(v * u, axis=1, keepdims=True) + 1e-6            # (2N, 1)
        vu1 = vu[:n]
        vu2 = vu[n:]
        mx = jnp.maximum(vu1, vu2)
        e1 = jnp.exp(vu1 - mx)
        e2 = jnp.exp(vu2 - mx)
        inv = 1.0 / (e1 + e2)
        a1 = e1 * inv
        a2 = e2 * inv
        emb_att = a1 * lat_c + a2 * lat_f                            # (N, D)

        # --- Decoders: Linear(D->H) then GCNConv(H->Fin), reassociated (A@H)@Wg ---
        h_dec = comb[:, dout:] + b_ref[2:3, :hid]                    # (2N, H) shared fc1
        h_att = mm(emb_att, wlat_ref[:dout, dout + hid:]) + b_ref[3:4, :hid]  # (N, H)
        m_c = mm(a_c, h_dec[:n])                                     # (N, H)
        m_f = mm(a_f, h_dec[n:])                                     # (N, H)
        m_a = mm(a_m, h_att)                                         # (N, H)
        m_cf = jnp.concatenate([m_c, m_f], axis=0)                   # (2N, H)
        r_cf = mm(m_cf, wdg_ref[:hid]) + b_ref[4:5, :fin]            # (2N, Fin)
        r_a = mm(m_a, wdg_ref[hid:]) + b_ref[5:6, :fin]              # (N, Fin)

        # --- single lane-dense packed output ---
        pieces = [r_cf[:n], r_cf[n:], r_a, emb_att, lat_c, lat_f, a1, a2]
        if pad > 0:
            pieces.append(jnp.zeros((n, pad), jnp.float32))
        out_ref[...] = jnp.concatenate(pieces, axis=1)

    inputs = _pack_inputs(features, a_coord, a_feat, a_comb, params)
    vmem = pl.BlockSpec(memory_space=pltpu.MemorySpace.VMEM)
    slab = pl.pallas_call(
        kernel,
        out_shape=jax.ShapeDtypeStruct((n, out_w), jnp.float32),
        in_specs=[vmem] * len(inputs),
        out_specs=vmem,
    )(*inputs)

    # split the packed output slab
    o = 3 * fin
    return {
        "emb_recon_coord": slab[:, 0:fin],
        "emb_recon_feat": slab[:, fin:2 * fin],
        "emb_recon_att": slab[:, 2 * fin:3 * fin],
        "emb_latent_att": slab[:, o:o + dout],
        "emb_latent_coord": slab[:, o + dout:o + 2 * dout],
        "emb_latent_feat": slab[:, o + 2 * dout:o + 3 * dout],
        "alpha": slab[:, o + 3 * dout:o + 3 * dout + 2],
    }


# ------------------- edge_index -> normalized dense adjacency -------------------
def edge_index_to_norm_adj(edge_index, num_nodes):
    # TODO(synk): torch_geometric GCNConv's sparse scatter-add message passing has
    # no clean Pallas equivalent at this scale; densify edge_index (scatter-add so
    # duplicate edges count, add remaining self-loops) and apply the standard
    # gcn_norm D^-1/2 (A+I) D^-1/2 in plain JAX.  Build once for static graphs.
    a = jnp.zeros((num_nodes, num_nodes), jnp.float32)
    a = a.at[edge_index[0], edge_index[1]].add(1.0)
    diag = jnp.diagonal(a)
    a = a + jnp.diag(jnp.where(diag > 0.0, 0.0, 1.0))
    deg = jnp.sum(a, axis=1)
    d_inv_sqrt = jax.lax.rsqrt(jnp.maximum(deg, 1e-12))
    return a * d_inv_sqrt[:, None] * d_inv_sqrt[None, :]


# -------------------------- parameter construction --------------------------
def _xavier(key, shape):
    bound = (6.0 / (shape[0] + shape[1])) ** 0.5
    return jax.random.uniform(key, shape, jnp.float32, -bound, bound)


def init_params(key, fin, hid, dout):
    ks = jax.random.split(key, 18)
    p = {}
    p["wg_ec"] = _xavier(ks[0], (fin, hid));   p["bg_ec"] = _xavier(ks[1], (1, hid))
    p["wf_ec"] = _xavier(ks[2], (hid, dout));  p["bf_ec"] = _xavier(ks[3], (1, dout))
    p["wg_ef"] = _xavier(ks[4], (fin, hid));   p["bg_ef"] = _xavier(ks[5], (1, hid))
    p["wf_ef"] = _xavier(ks[6], (hid, dout));  p["bf_ef"] = _xavier(ks[7], (1, dout))
    p["wf_d"]  = _xavier(ks[8], (dout, hid));  p["bf_d"]  = _xavier(ks[9], (1, hid))
    p["wg_d"]  = _xavier(ks[10], (hid, fin));  p["bg_d"]  = _xavier(ks[11], (1, fin))
    p["wf_da"] = _xavier(ks[12], (dout, hid)); p["bf_da"] = _xavier(ks[13], (1, hid))
    p["wg_da"] = _xavier(ks[14], (hid, fin));  p["bg_da"] = _xavier(ks[15], (1, fin))
    p["w_omega"] = _xavier(ks[16], (dout, dout))
    p["u_omega"] = _xavier(ks[17], (dout, 1))
    return p


# --------------------------- pure-JAX reference ---------------------------
def _ref_sage_forward(features, a_coord, a_feat, a_comb, p):
    hi = jax.lax.Precision.HIGHEST
    mm = lambda a, b: jnp.matmul(a, b, precision=hi)
    gcn = lambda x, a, w, b: mm(a, mm(x, w)) + b
    lin = lambda x, w, b: mm(x, w) + b

    lat_c = lin(gcn(features, a_coord, p["wg_ec"], p["bg_ec"]), p["wf_ec"], p["bf_ec"])
    lat_f = lin(gcn(features, a_feat, p["wg_ef"], p["bg_ef"]), p["wf_ef"], p["bf_ef"])

    emb = jnp.stack([lat_c, lat_f], axis=1)                          # (N, 2, D)
    v = jnp.tanh(jnp.matmul(emb, p["w_omega"], precision=hi))        # (N, 2, D)
    vu = jnp.squeeze(jnp.matmul(v, p["u_omega"], precision=hi), -1)  # (N, 2)
    alpha = jax.nn.softmax(vu + 1e-6, axis=-1)
    emb_att = jnp.squeeze(
        jnp.matmul(jnp.swapaxes(emb, 1, 2), alpha[..., None], precision=hi), -1)

    dec = lambda z, a, wf, bf, wg, bg: gcn(lin(z, wf, bf), a, wg, bg)
    rec_c = dec(lat_c, a_coord, p["wf_d"], p["bf_d"], p["wg_d"], p["bg_d"])
    rec_f = dec(lat_f, a_feat, p["wf_d"], p["bf_d"], p["wg_d"], p["bg_d"])
    rec_a = dec(emb_att, a_comb, p["wf_da"], p["bf_da"], p["wg_da"], p["bg_da"])

    return {"emb_latent_att": emb_att, "emb_recon_coord": rec_c,
            "emb_recon_feat": rec_f, "emb_recon_att": rec_a,
            "emb_latent_coord": lat_c, "emb_latent_feat": lat_f, "alpha": alpha}


# ---------------------------------- main ----------------------------------
if __name__ == "__main__":
    N, FIN, HID, DOUT = 16, 32, 16, 8     # nodes, dim_in, dim_hid, dim_out
    N_EDGES = 40

    key = jax.random.PRNGKey(0)
    k_feat, k_e1, k_e2, k_e3, k_par = jax.random.split(key, 5)

    features = jax.random.normal(k_feat, (N, FIN), dtype=jnp.float32)

    def rand_edges(k, e):
        k1, k2 = jax.random.split(k)
        src = jax.random.randint(k1, (e,), 0, N)
        dst = jax.random.randint(k2, (e,), 0, N)
        return jnp.stack([jnp.concatenate([src, dst]),
                          jnp.concatenate([dst, src])])   # symmetric edge_index

    # adjacencies built once (static graph) and reused for every forward
    a_coord = edge_index_to_norm_adj(rand_edges(k_e1, N_EDGES), N)
    a_feat = edge_index_to_norm_adj(rand_edges(k_e2, N_EDGES), N)
    a_comb = edge_index_to_norm_adj(rand_edges(k_e3, N_EDGES), N)

    params = init_params(k_par, FIN, HID, DOUT)

    fwd = jax.jit(sage_forward)
    out = fwd(features, a_coord, a_feat, a_comb, params)
    jax.block_until_ready(out)

    ref = _ref_sage_forward(features, a_coord, a_feat, a_comb, params)
    for name in ref:
        assert jnp.allclose(out[name], ref[name], rtol=1e-4, atol=1e-4), (
            name, out[name], ref[name])

    print("KERNEL_OK")
</pallas_src>

<mosaic_0001>
module attributes {stable_mosaic.version = 11 : i64} {
  func.func @kernel(%arg0: memref<16x32xf32, #tpu.memory_space<vmem>>, %arg1: memref<3x16x16xf32, #tpu.memory_space<vmem>>, %arg2: memref<32x32xf32, #tpu.memory_space<vmem>>, %arg3: memref<32x16xf32, #tpu.memory_space<vmem>>, %arg4: memref<9x40xf32, #tpu.memory_space<vmem>>, %arg5: memref<32x32xf32, #tpu.memory_space<vmem>>, %arg6: memref<6x32xf32, #tpu.memory_space<vmem>>, %arg7: memref<16x128xf32, #tpu.memory_space<vmem>>) attributes {dimension_semantics = [], scalar_prefetch = 0 : i64, scratch_operands = 0 : i64, tpu.core_type = #tpu.core_type<tc>} {
    %c0 = arith.constant 0 : index
    %c0_0 = arith.constant 0 : index
    %0 = vector.load %arg0[%c0, %c0_0] : memref<16x32xf32, #tpu.memory_space<vmem>>, vector<16x32xf32>
    %c0_1 = arith.constant 0 : index
    %c0_2 = arith.constant 0 : index
    %c0_3 = arith.constant 0 : index
    %1 = vector.load %arg1[%c0_1, %c0_2, %c0_3] : memref<3x16x16xf32, #tpu.memory_space<vmem>>, vector<1x16x16xf32>
    %2 = vector.shape_cast %1 : vector<1x16x16xf32> to vector<16x16xf32>
    %c1 = arith.constant 1 : index
    %c0_4 = arith.constant 0 : index
    %c0_5 = arith.constant 0 : index
    %3 = vector.load %arg1[%c1, %c0_4, %c0_5] : memref<3x16x16xf32, #tpu.memory_space<vmem>>, vector<1x16x16xf32>
    %4 = vector.shape_cast %3 : vector<1x16x16xf32> to vector<16x16xf32>
    %c2 = arith.constant 2 : index
    %c0_6 = arith.constant 0 : index
    %c0_7 = arith.constant 0 : index
    %5 = vector.load %arg1[%c2, %c0_6, %c0_7] : memref<3x16x16xf32, #tpu.memory_space<vmem>>, vector<1x16x16xf32>
    %6 = vector.shape_cast %5 : vector<1x16x16xf32> to vector<16x16xf32>
    %c0_8 = arith.constant 0 : index
    %c0_9 = arith.constant 0 : index
    %7 = vector.load %arg2[%c0_8, %c0_9] : memref<32x32xf32, #tpu.memory_space<vmem>>, vector<32x32xf32>
    %cst = arith.constant dense<0.000000e+00> : vector<16x32xf32>
    %8 = tpu.matmul %0, %7, %cst {dimension_numbers = #tpu.dot_dimension_numbers<[1], [0], [0], [1], [0, 0, 1, 1], [], []>} : vector<16x32xf32>, vector<32x32xf32>, vector<16x32xf32> -> vector<16x32xf32>
    %9 = vector.extract_strided_slice %8 {offsets = [0, 0], sizes = [16, 16], strides = [1, 1]} : vector<16x32xf32> to vector<16x16xf32>
    %cst_10 = arith.constant dense<0.000000e+00> : vector<16x16xf32>
    %10 = tpu.matmul %2, %9, %cst_10 {dimension_numbers = #tpu.dot_dimension_numbers<[1], [0], [0], [1], [0, 0, 1, 1], [], []>} : vector<16x16xf32>, vector<16x16xf32>, vector<16x16xf32> -> vector<16x16xf32>
    %11 = vector.extract_strided_slice %8 {offsets = [0, 16], sizes = [16, 16], strides = [1, 1]} : vector<16x32xf32> to vector<16x16xf32>
    %cst_11 = arith.constant dense<0.000000e+00> : vector<16x16xf32>
    %12 = tpu.matmul %4, %11, %cst_11 {dimension_numbers = #tpu.dot_dimension_numbers<[1], [0], [0], [1], [0, 0, 1, 1], [], []>} : vector<16x16xf32>, vector<16x16xf32>, vector<16x16xf32> -> vector<16x16xf32>
    %13 = tpu.concatenate %10, %12 in 1 : vector<16x16xf32>, vector<16x16xf32> -> vector<16x32xf32>
    %c0_12 = arith.constant 0 : index
    %c0_13 = arith.constant 0 : index
    %14 = vector.load %arg6[%c0_12, %c0_13] : memref<6x32xf32, #tpu.memory_space<vmem>>, vector<1x32xf32>
    %15 = vector.broadcast %14 : vector<1x32xf32> to vector<16x32xf32>
    %16 = arith.addf %13, %15 : vector<16x32xf32>
    %c0_14 = arith.constant 0 : index
    %c0_15 = arith.constant 0 : index
    %17 = vector.load %arg3[%c0_14, %c0_15] : memref<32x16xf32, #tpu.memory_space<vmem>>, vector<32x16xf32>
    %cst_16 = arith.constant dense<0.000000e+00> : vector<16x16xf32>
    %18 = tpu.matmul %16, %17, %cst_16 {dimension_numbers = #tpu.dot_dimension_numbers<[1], [0], [0], [1], [0, 0, 1, 1], [], []>} : vector<16x32xf32>, vector<32x16xf32>, vector<16x16xf32> -> vector<16x16xf32>
    %c1_17 = arith.constant 1 : index
    %c0_18 = arith.constant 0 : index
    %19 = vector.load %arg6[%c1_17, %c0_18] : memref<6x32xf32, #tpu.memory_space<vmem>>, vector<1x16xf32>
    %20 = vector.broadcast %19 : vector<1x16xf32> to vector<16x16xf32>
    %21 = arith.addf %18, %20 : vector<16x16xf32>
    %22 = vector.extract_strided_slice %21 {offsets = [0, 0], sizes = [16, 8], strides = [1, 1]} : vector<16x16xf32> to vector<16x8xf32>
    %23 = vector.extract_strided_slice %21 {offsets = [0, 8], sizes = [16, 8], strides = [1, 1]} : vector<16x16xf32> to vector<16x8xf32>
    %24 = tpu.concatenate %22, %23 in 0 : vector<16x8xf32>, vector<16x8xf32> -> vector<32x8xf32>
    %c0_19 = arith.constant 0 : index
    %c0_20 = arith.constant 0 : index
    %25 = vector.load %arg4[%c0_19, %c0_20] : memref<9x40xf32, #tpu.memory_space<vmem>>, vector<8x24xf32>
    %cst_21 = arith.constant dense<0.000000e+00> : vector<32x24xf32>
    %26 = tpu.matmul %24, %25, %cst_21 {dimension_numbers = #tpu.dot_dimension_numbers<[1], [0], [0], [1], [0, 0, 1, 1], [], []>} : vector<32x8xf32>, vector<8x24xf32>, vector<32x24xf32> -> vector<32x24xf32>
    %27 = vector.extract_strided_slice %26 {offsets = [0, 0], sizes = [32, 8], strides = [1, 1]} : vector<32x24xf32> to vector<32x8xf32>
    %28 = math.tanh %27 : vector<32x8xf32>
    %c8 = arith.constant 8 : index
    %c0_22 = arith.constant 0 : index
    %29 = vector.load %arg4[%c8, %c0_22] : memref<9x40xf32, #tpu.memory_space<vmem>>, vector<1x8xf32>
    %30 = vector.broadcast %29 : vector<1x8xf32> to vector<32x8xf32>
    %31 = arith.mulf %28, %30 : vector<32x8xf32>
    %cst_23 = arith.constant dense<0.000000e+00> : vector<32xf32>
    %32 = vector.multi_reduction <add>, %31, %cst_23 [1] : vector<32x8xf32> to vector<32xf32>
    %33 = vector.shape_cast %32 : vector<32xf32> to vector<32x1xf32>
    %cst_24 = arith.constant 9.99999997E-7 : f32
    %34 = vector.broadcast %cst_24 : f32 to vector<32x1xf32>
    %35 = arith.addf %33, %34 : vector<32x1xf32>
    %36 = vector.extract_strided_slice %35 {offsets = [0, 0], sizes = [16, 1], strides = [1, 1]} : vector<32x1xf32> to vector<16x1xf32>
    %37 = vector.extract_strided_slice %35 {offsets = [16, 0], sizes = [16, 1], strides = [1, 1]} : vector<32x1xf32> to vector<16x1xf32>
    %38 = arith.maximumf %36, %37 : vector<16x1xf32>
    %39 = arith.subf %36, %38 : vector<16x1xf32>
    %40 = math.exp %39 : vector<16x1xf32>
    %41 = arith.subf %37, %38 : vector<16x1xf32>
    %42 = math.exp %41 : vector<16x1xf32>
    %43 = arith.addf %40, %42 : vector<16x1xf32>
    %cst_25 = arith.constant 1.000000e+00 : f32
    %44 = vector.broadcast %cst_25 : f32 to vector<16x1xf32>
    %45 = arith.divf %44, %43 : vector<16x1xf32>
    %46 = arith.mulf %40, %45 : vector<16x1xf32>
    %47 = arith.mulf %42, %45 : vector<16x1xf32>
    %48 = vector.broadcast %46 : vector<16x1xf32> to vector<16x8xf32>
    %49 = arith.mulf %48, %22 : vector<16x8xf32>
    %50 = vector.broadcast %47 : vector<16x1xf32> to vector<16x8xf32>
    %51 = arith.mulf %50, %23 : vector<16x8xf32>
    %52 = arith.addf %49, %51 : vector<16x8xf32>
    %53 = vector.extract_strided_slice %26 {offsets = [0, 8], sizes = [32, 16], strides = [1, 1]} : vector<32x24xf32> to vector<32x16xf32>
    %c2_26 = arith.constant 2 : index
    %c0_27 = arith.constant 0 : index
    %54 = vector.load %arg6[%c2_26, %c0_27] : memref<6x32xf32, #tpu.memory_space<vmem>>, vector<1x16xf32>
    %55 = vector.broadcast %54 : vector<1x16xf32> to vector<32x16xf32>
    %56 = arith.addf %53, %55 : vector<32x16xf32>
    %c0_28 = arith.constant 0 : index
    %c24 = arith.constant 24 : index
    %57 = vector.load %arg4[%c0_28, %c24] : memref<9x40xf32, #tpu.memory_space<vmem>>, vector<8x16xf32>
    %cst_29 = arith.constant dense<0.000000e+00> : vector<16x16xf32>
    %58 = tpu.matmul %52, %57, %cst_29 {dimension_numbers = #tpu.dot_dimension_numbers<[1], [0], [0], [1], [0, 0, 1, 1], [], []>} : vector<16x8xf32>, vector<8x16xf32>, vector<16x16xf32> -> vector<16x16xf32>
    %c3 = arith.constant 3 : index
    %c0_30 = arith.constant 0 : index
    %59 = vector.load %arg6[%c3, %c0_30] : memref<6x32xf32, #tpu.memory_space<vmem>>, vector<1x16xf32>
    %60 = vector.broadcast %59 : vector<1x16xf32> to vector<16x16xf32>
    %61 = arith.addf %58, %60 : vector<16x16xf32>
    %62 = vector.extract_strided_slice %56 {offsets = [0, 0], sizes = [16, 16], strides = [1, 1]} : vector<32x16xf32> to vector<16x16xf32>
    %cst_31 = arith.constant dense<0.000000e+00> : vector<16x16xf32>
    %63 = tpu.matmul %2, %62, %cst_31 {dimension_numbers = #tpu.dot_dimension_numbers<[1], [0], [0], [1], [0, 0, 1, 1], [], []>} : vector<16x16xf32>, vector<16x16xf32>, vector<16x16xf32> -> vector<16x16xf32>
    %64 = vector.extract_strided_slice %56 {offsets = [16, 0], sizes = [16, 16], strides = [1, 1]} : vector<32x16xf32> to vector<16x16xf32>
    %cst_32 = arith.constant dense<0.000000e+00> : vector<16x16xf32>
    %65 = tpu.matmul %4, %64, %cst_32 {dimension_numbers = #tpu.dot_dimension_numbers<[1], [0], [0], [1], [0, 0, 1, 1], [], []>} : vector<16x16xf32>, vector<16x16xf32>, vector<16x16xf32> -> vector<16x16xf32>
    %cst_33 = arith.constant dense<0.000000e+00> : vector<16x16xf32>
    %66 = tpu.matmul %6, %61, %cst_33 {dimension_numbers = #tpu.dot_dimension_numbers<[1], [0], [0], [1], [0, 0, 1, 1], [], []>} : vector<16x16xf32>, vector<16x16xf32>, vector<16x16xf32> -> vector<16x16xf32>
    %67 = tpu.concatenate %63, %65 in 0 : vector<16x16xf32>, vector<16x16xf32> -> vector<32x16xf32>
    %c0_34 = arith.constant 0 : index
    %c0_35 = arith.constant 0 : index
    %68 = vector.load %arg5[%c0_34, %c0_35] : memref<32x32xf32, #tpu.memory_space<vmem>>, vector<16x32xf32>
    %cst_36 = arith.constant dense<0.000000e+00> : vector<32x32xf32>
    %69 = tpu.matmul %67, %68, %cst_36 {dimension_numbers = #tpu.dot_dimension_numbers<[1], [0], [0], [1], [0, 0, 1, 1], [], []>} : vector<32x16xf32>, vector<16x32xf32>, vector<32x32xf32> -> vector<32x32xf32>
    %c4 = arith.constant 4 : index
    %c0_37 = arith.constant 0 : index
    %70 = vector.load %arg6[%c4, %c0_37] : memref<6x32xf32, #tpu.memory_space<vmem>>, vector<1x32xf32>
    %71 = vector.broadcast %70 : vector<1x32xf32> to vector<32x32xf32>
    %72 = arith.addf %69, %71 : vector<32x32xf32>
    %c16 = arith.constant 16 : index
    %c0_38 = arith.constant 0 : index
    %73 = vector.load %arg5[%c16, %c0_38] : memref<32x32xf32, #tpu.memory_space<vmem>>, vector<16x32xf32>
    %cst_39 = arith.constant dense<0.000000e+00> : vector<16x32xf32>
    %74 = tpu.matmul %66, %73, %cst_39 {dimension_numbers = #tpu.dot_dimension_numbers<[1], [0], [0], [1], [0, 0, 1, 1], [], []>} : vector<16x16xf32>, vector<16x32xf32>, vector<16x32xf32> -> vector<16x32xf32>
    %c5 = arith.constant 5 : index
    %c0_40 = arith.constant 0 : index
    %75 = vector.load %arg6[%c5, %c0_40] : memref<6x32xf32, #tpu.memory_space<vmem>>, vector<1x32xf32>
    %76 = vector.broadcast %75 : vector<1x32xf32> to vector<16x32xf32>
    %77 = arith.addf %74, %76 : vector<16x32xf32>
    %78 = vector.extract_strided_slice %72 {offsets = [0, 0], sizes = [16, 32], strides = [1, 1]} : vector<32x32xf32> to vector<16x32xf32>
    %79 = vector.extract_strided_slice %72 {offsets = [16, 0], sizes = [16, 32], strides = [1, 1]} : vector<32x32xf32> to vector<16x32xf32>
    %cst_41 = arith.constant 0.000000e+00 : f32
    %80 = vector.broadcast %cst_41 : f32 to vector<16x6xf32>
    %81 = tpu.concatenate %78, %79, %77, %52, %22, %23, %46, %47, %80 in 1 : vector<16x32xf32>, vector<16x32xf32>, vector<16x32xf32>, vector<16x8xf32>, vector<16x8xf32>, vector<16x8xf32>, vector<16x1xf32>, vector<16x1xf32>, vector<16x6xf32> -> vector<16x128xf32>
    %c0_42 = arith.constant 0 : index
    %c0_43 = arith.constant 0 : index
    %82 = vector.load %arg7[%c0_42, %c0_43] : memref<16x128xf32, #tpu.memory_space<vmem>>, vector<16x128xf32>
    tpu.vector_store %arg7[%c0_42, %c0_43], %81 {strides = array<i32>} : memref<16x128xf32, #tpu.memory_space<vmem>>, vector<16x128xf32>,
    return
  }
}

</mosaic_0001>

<bundles_post_ra>
// kernel: sage_forward.1
= control target key start
LH: loop header
LB: loop body
LE: loop exit
PB: predicated region body
PF: predicated region fallthrough
CT: control target
= control target key end

     0   :  { %vm40_vm0 = vcmask 261120   ;;  %vm70_vm1 = vcmask 130048   ;;  %s679_s24 = smov 16   ;;  %vm193_vm2 = vcmask 64512   ;;  %s680_s11 = smov 120   ;;  %vm565_vm11 = vcmask 523264   ;;  %s933_s2 = inlined_call_operand.vmem [shape: f32[32,32], index: 2, kind: input, shape index: {}]   ;;  %s934_s0 = inlined_call_operand.vmem [shape: f32[16,32], index: 0, kind: input, shape index: {}]   ;;  %s935_s1 = inlined_call_operand.vmem [shape: f32[3,16,16], index: 1, kind: input, shape index: {}]   ;;  %s936_s3 = inlined_call_operand.vmem [shape: f32[32,16], index: 3, kind: input, shape index: {}]   ;;  %s937_s6 = inlined_call_operand.vmem [shape: f32[6,32], index: 6, kind: input, shape index: {}]   ;;  %s938_s4 = inlined_call_operand.vmem [shape: f32[9,40], index: 4, kind: input, shape index: {}]   ;;  %s939_s5 = inlined_call_operand.vmem [shape: f32[32,32], index: 5, kind: input, shape index: {}]   ;;  %s940_s7 = inlined_call_operand.vmem [shape: f32[16,128], index: 7, kind: output, shape index: {}]  }
   0x1   :  { %v39_v0 = vld [vmem:[%s933_s2 + $0x18] sm:$0xff]  ;;  %v38_v1 = vld [vmem:[%s933_s2 + $0x10] sm:$0xff]  ;;  %v37_v2 = vld [vmem:[%s933_s2 + $0x8] sm:$0xff]  ;;  %s683_s15 = smov 96   ;;  %s685_s9 = smov 64   ;;  %vm571_vm12 = vcmask 850944  }
   0x2   :  { %59 = vmatpush.msra.mxu0 %v39_v0  ;;  %622 = vmatpush.msra.mxu1 %v39_v0  ;;  %v36_v3 = vld [vmem:[%s933_s2] sm:$0xff]  ;;  %v27_v5 = vld [vmem:[%s934_s0 + $0x8] sm:$0xff]  ;;  %s678_s2 = smov 112   ;;  %v756_v13 = vld [vmem:[%s935_s1 + $0x10] sm:$0xff]  ;;  %vm568_vm13 = vcmask 785408   ;;  %vm574_vm14 = vcmask 916480  }
   0x3   :  { %v26_v4 = vld [vmem:[%s934_s0] sm:$0xff]  ;;  %v763_v14 = vld [vmem:[%s935_s1 + $0x18] sm:$0xff]  ;;  %v770_v15 = vld [vmem:[%s935_s1 + $0x8] sm:$0xff]  ;;  %s682_s0 = smov 8   ;;  %vm577_vm15 = vcmask 982016  }
   0x4   :  { %60 = vmatpush.msra.mxu0 %v38_v1  ;;  %623 = vmatpush.msra.mxu1 %v38_v1  ;;  %v749_v9 = vld [vmem:[%s935_s1] sm:$0xff]  ;;  %v154_v16 = vld [vmem:[%s936_s3 + $0x18] sm:$0xff]  ;;  %v153_v17 = vld [vmem:[%s936_s3 + $0x10] sm:$0xff] }
   0x5   :  { %175 = vmatpush.msra.mxu3 %v154_v16  ;;  %v152_v20 = vld [vmem:[%s936_s3 + $0x8] sm:$0xff]  ;;  %v151_v21 = vld [vmem:[%s936_s3] sm:$0xff]  ;;  %s684_s3 = smov 32  }
   0x6   :  { %61 = vmatpush.msra.mxu0 %v37_v2  ;;  %624 = vmatpush.msra.mxu1 %v37_v2  ;;  %v651_v23 = vld [vmem:[%s937_s6] ss:$0 sm:$0xff]  ;;  %v652_v32 = vld [vmem:[%s937_s6 + $0x1] ss:$0 sm:$0xff]  ;;  %v653_v40 = vld [vmem:[%s938_s4 + $0x8] ss:$0 sm:$0xff] }
   0x7   :  { %176 = vmatpush.msra.mxu3 %v153_v17  ;;  %v192_v31 = vld [vmem:[%s938_s4] sm:$0xff]  ;;  %s681_s4 = smov 104  }
   0x8   :  { %62 = vmatpush.msra.mxu0 %v36_v3  ;;  %625 = vmatpush.msra.mxu1 %v36_v3  ;;  %v654_v56 = vld [vmem:[%s937_s6 + $0x2] ss:$0 sm:$0xff] }
   0x9   :  { %596 = vmatmul.msk.f32.vlgmr.msra.gmra.mxu0 %vm40_vm0, %v26_v4  ;;  %597 = vmatmul.msk.f32.vlgmr.msra.gmra.mxu1 %vm40_vm0, %v27_v5 }
   0xa   :  { %177 = vmatpush.msra.mxu3 %v152_v20 }
   0xc   :  { %178 = vmatpush.msra.mxu3 %v151_v21 }
  0x86   :  { %v64_v6 = vpop.f32.mrf.mxu0  ;;  %v67_v7 = vpop.f32.mrf.mxu1 }
  0x87   :  { %91 = vmatpush.msrb.mxu1 %v67_v7  ;;  %v636_v8 = vpack.i.bf16 %v64_v6, %v67_v7 }
  0x89   :  { %637 = vrot.lane.b32.xlu0 %v636_v8, %s678_s2  ;;  %92 = vmatpush.msrb.mxu1 %v64_v6 }
  0x8a   :  { %598 = vmatmul.msk.f32.vlgmr.msrb.gmra.mxu1 %vm70_vm1, %v749_v9 }
  0x8b   :  { %217 = vmatpush.msra.mxu1 %v192_v31 }
  0x92   :  { %599 = vmatmul.msk.f32.gmra.mxu1 %vm70_vm1, %v770_v15 }
  0xfb   :  { %v638_v10 = vpop.permute.xlu0 %637 }
  0xfc   :  { %v639_v11 = vunpack.i.l.bf16 %v638_v10  ;;  %v640_v12 = vunpack.i.h.bf16 %v638_v10 }
  0xfe   :  { %128 = vmatpush.msra.mxu2 %v639_v11 }
 0x100   :  { %129 = vmatpush.msra.mxu2 %v640_v12 }
 0x101   :  { %600 = vmatmul.msk.f32.vlgmr.msra.gmra.mxu2 %vm70_vm1, %v756_v13 }
 0x107   :  { %v94_v22 = vpop.f32.mrf.mxu1 }
 0x109   :  { %601 = vmatmul.msk.f32.gmra.mxu2 %vm70_vm1, %v763_v14 }
 0x10f   :  { %v97_v27 = vpop.f32.mrf.mxu1 }
 0x184   :  { %v131_v18 = vpop.f32.mrf.mxu2 }
 0x185   :  { %139 = vrot.lane.b32.xlu0 %v131_v18, %s679_s24 }
 0x18c   :  { %v134_v19 = vpop.f32.mrf.mxu2 }
 0x18d   :  { %141 = vrot.lane.b32.xlu1 %v134_v19, %s679_s24 }
 0x1f7   :  { %v140_v24 = vpop.permute.xlu0 %139 }
 0x1f8   :  { %v145_v25 = vsel %vm70_vm1, %v94_v22, %v140_v24 }
 0x1f9   :  { %v149_v26 = vadd.f32 %v651_v23, %v145_v25 }
 0x1fb   :  { %602 = vmatmul.msk.f32.vlgmr.msra.gmra.mxu3 %vm40_vm0, %v149_v26 }
 0x1ff   :  { %v142_v28 = vpop.permute.xlu1 %141 }
 0x200   :  { %v146_v29 = vsel %vm70_vm1, %v97_v27, %v142_v28 }
 0x201   :  { %v150_v30 = vadd.f32 %v651_v23, %v146_v29 }
 0x203   :  { %603 = vmatmul.msk.f32.gmra.mxu3 %vm40_vm0, %v150_v30 }
 0x27e   :  { %v180_v33 = vpop.f32.mrf.mxu3 }
 0x27f   :  { %v799_v34 = vadd.f32 %v652_v32, %v180_v33 }
 0x281   :  { %188 = vrot.lane.b32.xlu1 %v799_v34, %s680_s11  ;;  %604 = vmatmul.msk.f32.vlgmr.msra.gmra.mxu1 %vm193_vm2, %v799_v34 }
 0x286   :  { %v183_v35 = vpop.f32.mrf.mxu3 }
 0x287   :  { %v805_v36 = vadd.f32 %v652_v32, %v183_v35 }
 0x289   :  { %190 = vrot.lane.b32.xlu2 %v805_v36, %s680_s11  ;;  %605 = vmatmul.msk.f32.gmra.mxu1 %vm193_vm2, %v805_v36 }
 0x2e3   :  { %v191_v38 = vpop.permute.xlu2 %190 }
 0x2f3   :  { %v189_v37 = vpop.permute.xlu1 %188 }
 0x2f4   :  { %606 = vmatmul.msk.f32.gmra.mxu1 %vm193_vm2, %v189_v37 }
 0x2fc   :  { %607 = vmatmul.msk.f32.gmra.mxu1 %vm193_vm2, %v191_v38 }
 0x2fe   :  { %v813_v39 = vpop.f32.mrf.mxu1 }
 0x2ff   :  { %658 = vtanh.f32 %v813_v39 }
 0x305   :  { %v659_v41 = vpop.eup %658 }
 0x306   :  { %v237_v42 = vmul.f32 %v659_v41, %v653_v40  ;;  %v819_v43 = vpop.f32.mrf.mxu1 }
 0x307   :  { %660 = vtanh.f32 %v819_v43 }
 0x308   :  { %v241_v44 = vsel %vm193_vm2, %v237_v42, 0.0 }
 0x309   :  { %242 = vadd.xlane.f32.xlu2 %v241_v44 }
 0x30d   :  { %v661_v45 = vpop.eup %660 }
 0x30e   :  { %v238_v46 = vmul.f32 %v661_v45, %v653_v40 }
 0x310   :  { %v244_v47 = vsel %vm193_vm2, %v238_v46, 0.0 }
 0x311   :  { %245 = vadd.xlane.f32.xlu1 %v244_v47 }
 0x371   :  { %v824_v48 = vpop.f32.mrf.mxu1 }
 0x372   :  { %662 = vtanh.f32 %v824_v48 }
 0x378   :  { %v663_v49 = vpop.eup %662 }
 0x379   :  { %v827_v50 = vpop.f32.mrf.mxu1  ;;  %v239_v51 = vmul.f32 %v663_v49, %v653_v40 }
 0x37a   :  { %664 = vtanh.f32 %v827_v50 }
 0x37b   :  { %v247_v52 = vsel %vm193_vm2, %v239_v51, 0.0 }
 0x37c   :  { %248 = vadd.xlane.f32.xlu0 %v247_v52  ;;  %v243_v57 = vpop.xlane.xlu2 %242 }
 0x37d   :  { %v253_v59 = vadd.f32 1e-06, %v243_v57 }
 0x380   :  { %v665_v53 = vpop.eup %664 }
 0x381   :  { %v240_v54 = vmul.f32 %v665_v53, %v653_v40 }
 0x383   :  { %v250_v55 = vsel %vm193_vm2, %v240_v54, 0.0 }
 0x384   :  { %251 = vadd.xlane.f32.xlu2 %v250_v55  ;;  %v246_v0 = vpop.xlane.xlu1 %245 }
 0x385   :  { %v254_v4 = vadd.f32 1e-06, %v246_v0 }
 0x390   :  { %334 = vrot.lane.b32.xlu0 %v192_v31, %s681_s4 }
 0x398   :  { %324 = vrot.lane.b32.xlu0 %v654_v56, %s682_s0 }
 0x3ef   :  { %v249_v58 = vpop.xlane.xlu0 %248 }
 0x3f0   :  { %v255_v60 = vadd.f32 1e-06, %v249_v58 }
 0x3f2   :  { %v257_v61 = vmax.f32 %v253_v59, %v255_v60 }
 0x3f4   :  { %v259_v62 = vsub.f32 %v253_v59, %v257_v61  ;;  %v265_v63 = vsub.f32 %v255_v60, %v257_v61 }
 0x3f6   :  { %v261_v1 = vmul.f32 1.442695, %v259_v62  ;;  %v267_v2 = vmul.f32 1.442695, %v265_v63 }
 0x3f7   :  { %v252_v3 = vpop.xlane.xlu2 %251 }
 0x3f8   :  { %666 = vpow2.f32 %v261_v1  ;;  %v256_v5 = vadd.f32 1e-06, %v252_v3 }
 0x3f9   :  { %668 = vpow2.f32 %v267_v2 }
 0x3fa   :  { %v258_v6 = vmax.f32 %v254_v4, %v256_v5 }
 0x3fc   :  { %v260_v7 = vsub.f32 %v254_v4, %v258_v6  ;;  %v266_v8 = vsub.f32 %v256_v5, %v258_v6  ;;  %v457_v5 = vld [vmem:[%s939_s5] sm:$0xff] }
 0x3fe   :  { %v667_v10 = vpop.eup %666  ;;  %v263_v11 = vmul.f32 1.442695, %v260_v7  ;;  %v269_v12 = vmul.f32 1.442695, %v266_v8 }
 0x3ff   :  { %v669_v16 = vpop.eup %668 }
 0x400   :  { %v271_v17 = vadd.f32 %v669_v16, %v667_v10  ;;  %670 = vpow2.f32 %v263_v11 }
 0x401   :  { %672 = vpow2.f32 %v269_v12  ;;  %v595_v12 = vld [vmem:[%s935_s1 + $0x28] sm:$0xff] }
 0x402   :  { %674 = vrcp.f32 %v271_v17  ;;  %v335_v18 = vpop.permute.xlu0 %334  ;;  %v284_v25 = vand.u32 2147483648, %v271_v17  ;;  %v282_v27 = vand.u32 2147483647, %v271_v17  ;;  %vm278_vm4 = vweird.f32 %v271_v17 }
 0x403   :  { %358 = vmatpush.msrb.mxu2 %v335_v18  ;;  %v503_v18 = vld [vmem:[%s939_s5 + $0x18] sm:$0xff] }
 0x404   :  { %v285_v30 = vor.u32 1.1754944e-38, %v284_v25  ;;  %vm283_vm6 = vcmp.eq.f32.partialorder %v282_v27, 8.507059e+37 }
 0x406   :  { %v671_v19 = vpop.eup %670 }
 0x407   :  { %v673_v20 = vpop.eup %672 }
 0x408   :  { %v675_v21 = vpop.eup %674  ;;  %v272_v22 = vadd.f32 %v673_v20, %v671_v19 }
 0x409   :  { %v274_v23 = vmul.f32 %v675_v21, %v271_v17  ;;  %vm279_vm3 = vweird.f32 %v675_v21 }
 0x40a   :  { %676 = vrcp.f32 %v272_v22  ;;  %vm280_vm5 = vmor %vm278_vm4, %vm279_vm3  ;;  %v299_v38 = vand.u32 2147483648, %v272_v22  ;;  %v297_v42 = vand.u32 2147483647, %v272_v22  ;;  %v325_v45 = vpop.permute.xlu0 %324  ;;  %vm293_vm8 = vweird.f32 %v272_v22 }
 0x40b   :  { %v275_v24 = vsub.f32 1.0, %v274_v23  ;;  %v327_v51 = vadd.f32 %v325_v45, %v813_v39  ;;  %v328_v52 = vadd.f32 %v325_v45, %v819_v43  ;;  %v329_v58 = vadd.f32 %v325_v45, %v824_v48 }
 0x40c   :  { %v300_v47 = vor.u32 1.1754944e-38, %v299_v38  ;;  %vm298_vm10 = vcmp.eq.f32.partialorder %v297_v42, 8.507059e+37  ;;  %v330_v59 = vadd.f32 %v325_v45, %v827_v50 }
 0x40d   :  { %v276_v26 = vmul.f32 %v675_v21, %v275_v24  ;;  %v641_v57 = vpack.i.bf16 %v327_v51, %v328_v52 }
 0x40e   :  { %v646_v39 = vpack.i.bf16 %v329_v58, %v330_v59 }
 0x40f   :  { %v277_v29 = vadd.f32 %v675_v21, %v276_v26 }
 0x410   :  { %v677_v28 = vpop.eup %676 }
 0x411   :  { %v289_v31 = vmul.f32 %v677_v28, %v272_v22  ;;  %v281_v32 = vsel %vm280_vm5, %v675_v21, %v277_v29  ;;  %vm294_vm7 = vweird.f32 %v677_v28  ;;  %v502_v22 = vld [vmem:[%s939_s5 + $0x10] sm:$0xff] }
 0x412   :  { %v286_v33 = vsel %vm283_vm6, %v285_v30, %v281_v32  ;;  %vm295_vm9 = vmor %vm293_vm8, %vm294_vm7 }
 0x413   :  { %v290_v35 = vsub.f32 1.0, %v289_v31  ;;  %v836_v37 = vmul.f32 %v669_v16, %v286_v33  ;;  %v838_v40 = vmul.f32 %v667_v10, %v286_v33  ;;  %v594_v10 = vld [vmem:[%s935_s1 + $0x20] sm:$0xff] }
 0x414   :  { %v657_v31 = vld [vmem:[%s937_s6 + $0x5] ss:$0 sm:$0xff] }
 0x415   :  { %v291_v41 = vmul.f32 %v677_v28, %v290_v35  ;;  %v309_v44 = vmul.f32 %v836_v37, %v799_v34  ;;  %v307_v43 = vmul.f32 %v838_v40, %v799_v34 }
 0x417   :  { %v292_v46 = vadd.f32 %v677_v28, %v291_v41  ;;  %313 = vrot.lane.b32.xlu2 %v309_v44, %s680_s11 }
 0x419   :  { %v296_v49 = vsel %vm295_vm9, %v677_v28, %v292_v46 }
 0x41a   :  { %v301_v53 = vsel %vm298_vm10, %v300_v47, %v296_v49 }
 0x41b   :  { %v845_v54 = vmul.f32 %v673_v20, %v301_v53  ;;  %v847_v55 = vmul.f32 %v671_v19, %v301_v53  ;;  %v656_v19 = vld [vmem:[%s937_s6 + $0x4] ss:$0 sm:$0xff] }
 0x41d   :  { %v310_v56 = vmul.f32 %v845_v54, %v805_v36  ;;  %v308_v50 = vmul.f32 %v847_v55, %v805_v36 }
 0x41f   :  { %315 = vrot.lane.b32.xlu1 %v310_v56, %s680_s11  ;;  %642 = vrot.lane.b32.xlu2 %v641_v57, %s680_s11 }
 0x427   :  { %647 = vrot.lane.b32.xlu1 %v646_v39, %s680_s11 }
 0x471   :  { %v314_v60 = vpop.permute.xlu2 %313 }
 0x472   :  { %v319_v61 = vadd.f32 %v314_v60, %v307_v43 }
 0x474   :  { %551 = vrot.lane.b32.xlu2 %v319_v61, %s683_s15  ;;  %608 = vmatmul.msk.f32.vlgmr.msrb.gmra.mxu2 %vm193_vm2, %v319_v61 }
 0x479   :  { %v643_v62 = vpop.permute.xlu2 %642 }
 0x47a   :  { %v644_v63 = vunpack.i.l.bf16 %v643_v62  ;;  %v645_v48 = vunpack.i.h.bf16 %v643_v62 }
 0x47c   :  { %388 = vmatpush.msrb.mxu0 %v644_v63  ;;  %626 = vmatpush.msra.mxu2 %v644_v63 }
 0x47e   :  { %389 = vmatpush.msrb.mxu0 %v645_v48  ;;  %627 = vmatpush.msra.mxu2 %v645_v48 }
 0x47f   :  { %610 = vmatmul.msk.f32.vlgmr.msrb.gmra.mxu0 %vm70_vm1, %v749_v9  ;;  %v458_v9 = vld [vmem:[%s939_s5 + $0x8] sm:$0xff] }
 0x480   :  { %487 = vmatpush.msra.mxu0 %v458_v9 }
 0x482   :  { %488 = vmatpush.msra.mxu0 %v457_v5 }
 0x491   :  { %v316_v0 = vpop.permute.xlu1 %315 }
 0x492   :  { %v320_v1 = vadd.f32 %v316_v0, %v308_v50 }
 0x494   :  { %609 = vmatmul.msk.f32.gmra.mxu2 %vm193_vm2, %v320_v1  ;;  %vm583_vm2 = vcmask 998400  }
 0x499   :  { %v648_v2 = vpop.permute.xlu1 %647 }
 0x49a   :  { %v649_v3 = vunpack.i.l.bf16 %v648_v2  ;;  %v650_v4 = vunpack.i.h.bf16 %v648_v2 }
 0x49c   :  { %611 = vmatmul.msk.f32.vlgmr.msra.gmra.mxu2 %vm70_vm1, %v770_v15  ;;  %419 = vmatpush.msrb.mxu3 %v649_v3 }
 0x49e   :  { %420 = vmatpush.msrb.mxu3 %v650_v4 }
 0x49f   :  { %612 = vmatmul.msk.f32.vlgmr.msrb.gmra.mxu3 %vm70_vm1, %v756_v13  ;;  %v655_v13 = vld [vmem:[%s937_s6 + $0x3] ss:$0 sm:$0xff] }
 0x4a0   :  { %526 = vmatpush.msra.mxu3 %v503_v18 }
 0x4a2   :  { %527 = vmatpush.msra.mxu3 %v502_v22 }
 0x4a7   :  { %613 = vmatmul.msk.f32.gmra.mxu3 %vm70_vm1, %v763_v14 }
 0x4ce   :  { %v552_v41 = vpop.permute.xlu2 %551 }
 0x4f7   :  { %v360_v6 = vpop.f32.mrf.mxu2 }
 0x4f8   :  { %v361_v8 = vadd.f32 %v655_v13, %v360_v6 }
 0x4fc   :  { %v391_v15 = vpop.f32.mrf.mxu0 }
 0x4fd   :  { %616 = vmatmul.msk.f32.vlgmr.msra.gmra.mxu0 %vm70_vm1, %v391_v15 }
 0x517   :  { %v363_v7 = vpop.f32.mrf.mxu2 }
 0x518   :  { %v364_v14 = vadd.f32 %v655_v13, %v363_v7 }
 0x51a   :  { %448 = vmatpush.msrb.mxu2 %v364_v14 }
 0x51c   :  { %449 = vmatpush.msrb.mxu2 %v361_v8 }
 0x51d   :  { %614 = vmatmul.msk.f32.vlgmr.msrb.gmra.mxu2 %vm70_vm1, %v594_v10 }
 0x51f   :  { %v394_v11 = vpop.f32.mrf.mxu2 }
 0x520   :  { %617 = vmatmul.msk.f32.gmra.mxu0 %vm70_vm1, %v394_v11 }
 0x522   :  { %v422_v16 = vpop.f32.mrf.mxu3 }
 0x525   :  { %615 = vmatmul.msk.f32.gmra.mxu2 %vm70_vm1, %v595_v12 }
 0x528   :  { %618 = vmatmul.msk.f32.gmra.mxu0 %vm70_vm1, %v422_v16 }
 0x52a   :  { %v425_v17 = vpop.f32.mrf.mxu3 }
 0x530   :  { %619 = vmatmul.msk.f32.gmra.mxu0 %vm70_vm1, %v425_v17 }
 0x57a   :  { %v490_v20 = vpop.f32.mrf.mxu0 }
 0x57b   :  { %v491_v21 = vadd.f32 %v656_v19, %v490_v20 }
 0x59d   :  { %v493_v23 = vpop.f32.mrf.mxu0 }
 0x59e   :  { %v494_v24 = vadd.f32 %v656_v19, %v493_v23 }
 0x5a0   :  { %v451_v25 = vpop.f32.mrf.mxu2 }
 0x5a1   :  { %620 = vmatmul.msk.f32.vlgmr.msra.gmra.mxu3 %vm70_vm1, %v451_v25 }
 0x5a5   :  { %v496_v26 = vpop.f32.mrf.mxu0 }
 0x5a6   :  { %v497_v27 = vadd.f32 %v656_v19, %v496_v26 }
 0x5a8   :  { %v454_v28 = vpop.f32.mrf.mxu2  ;;  %537 = vrot.lane.b32.xlu0 %v497_v27, %s684_s3 }
 0x5a9   :  { %621 = vmatmul.msk.f32.gmra.mxu3 %vm70_vm1, %v454_v28  ;;  %vm580_vm1 = vcmask 990208  }
 0x5ad   :  { %v499_v29 = vpop.f32.mrf.mxu0 }
 0x5ae   :  { %v500_v30 = vadd.f32 %v656_v19, %v499_v29 }
 0x5b0   :  { %539 = vrot.lane.b32.xlu2 %v500_v30, %s684_s3 }
 0x5b8   :  { %559 = vrot.lane.b32.xlu2 %v805_v36, %s681_s4 }
 0x60a   :  { %v540_v42 = vpop.permute.xlu2 %539 }
 0x60b   :  { %v564_v45 = vsel %vm40_vm0, %v494_v24, %v540_v42 }
 0x612   :  { %v560_v51 = vpop.permute.xlu2 %559 }
 0x61a   :  { %v538_v44 = vpop.permute.xlu0 %537 }
 0x61b   :  { %v563_v53 = vsel %vm40_vm0, %v491_v21, %v538_v44 }
 0x624   :  { %v529_v32 = vpop.f32.mrf.mxu3 }
 0x625   :  { %v530_v33 = vadd.f32 %v657_v31, %v529_v32 }
 0x627   :  { %545 = vrot.lane.b32.xlu1 %v530_v33, %s685_s9 }
 0x62c   :  { %v532_v35 = vpop.f32.mrf.mxu3 }
 0x62d   :  { %v533_v38 = vadd.f32 %v657_v31, %v532_v35 }
 0x62f   :  { %553 = vrot.lane.b32.xlu1 %v320_v1, %s683_s15  ;;  %547 = vrot.lane.b32.xlu0 %v533_v38, %s685_s9 }
 0x637   :  { %557 = vrot.lane.b32.xlu0 %v799_v34, %s681_s4 }
 0x699   :  { %v546_v36 = vpop.permute.xlu1 %545 }
 0x69a   :  { %v566_v57 = vsel %vm565_vm11, %v563_v53, %v546_v36 }
 0x69b   :  { %v569_v60 = vsel %vm568_vm13, %v566_v57, %v552_v41 }
 0x6a1   :  { %v554_v46 = vpop.permute.xlu1 %553  ;;  %v548_v47 = vpop.permute.xlu0 %547 }
 0x6a2   :  { %v567_v49 = vsel %vm565_vm11, %v564_v45, %v548_v47 }
 0x6a3   :  { %v570_v52 = vsel %vm568_vm13, %v567_v49, %v554_v46 }
 0x6a4   :  { %v573_v34 = vsel %vm571_vm12, %v570_v52, %v560_v51 }
 0x6a5   :  { %v576_v56 = vsel %vm574_vm14, %v573_v34, %v560_v51 }
 0x6a6   :  { %v579_v58 = vsel %vm577_vm15, %v576_v56, %v847_v55 }
 0x6a7   :  { %v582_v59 = vsel %vm580_vm1, %v579_v58, %v845_v54 }
 0x6a8   :  { %v585_v39 = vsel %vm583_vm2, %v582_v59, 0.0 }
 0x6a9   :  { %v558_v43 = vpop.permute.xlu0 %557  ;;  %587 = vst [vmem:[%s940_s7 + $0x8] sm:$0xff] %v585_v39 }
 0x6aa   :  { %v572_v61 = vsel %vm571_vm12, %v569_v60, %v558_v43 }
 0x6ab   :  { %v575_v62 = vsel %vm574_vm14, %v572_v61, %v558_v43 }
 0x6ac   :  { %v578_v63 = vsel %vm577_vm15, %v575_v62, %v838_v40 }
 0x6ad   :  { %v581_v55 = vsel %vm580_vm1, %v578_v63, %v836_v37 }
 0x6ae   :  { %v584_v48 = vsel %vm583_vm2, %v581_v55, 0.0 }
 0x6af   :  { %586 = vst [vmem:[%s940_s7] sm:$0xff] %v584_v48 }

</bundles_post_ra>
